<compile_context>
chip_gen: v7x
topology: tpu7x:2x2x1
jax: 0.10.0
libtpu: 0.0.40
codegen_flags: <defaults>
</compile_context>

<pallas_src>
import functools

import jax
import jax.numpy as jnp
import numpy as np
from jax.experimental import pallas as pl
from jax.experimental.pallas import tpu as pltpu


def _round_up(x, m):
    return ((x + m - 1) // m) * m


def _cdiv(a, b):
    return (a + b - 1) // b


# -----------------------------------------------------------------------------
# Kernel
# -----------------------------------------------------------------------------
def rffn_kernel(x_ref, w1_ref, w2_ref, o_ref, acc_ref, *, exp_dtype):
    j = pl.program_id(1)  # nfeat-tile (reduction) axis, last in grid

    @pl.when(j == 0)
    def _():
        acc_ref[...] = jnp.zeros_like(acc_ref)

    # Bias is folded into W1 (extra contraction row against x's ones column),
    # so a single MXU dot produces h. MXU accumulation is f32.
    h = jnp.dot(x_ref[...], w1_ref[...], preferred_element_type=jnp.float32)

    # Gaussian activation: exp(-h^2), negate fused into the square.
    # Optionally run the exp in bf16 (v6e/v7x EUP is ~2x in bf16); keep the
    # default f32 on v5e (no bf16 VPU/EUP there).
    nh2 = h * (-h)
    if jnp.dtype(exp_dtype) != jnp.dtype(jnp.float32):
        nh2 = nh2.astype(exp_dtype)
    g = jnp.exp(nh2)

    # Accumulate the partial output: g_tile @ W2_tile -> (tb, out_dim_p), f32.
    acc_ref[...] += jnp.dot(g.astype(w2_ref.dtype), w2_ref[...],
                            preferred_element_type=jnp.float32)

    @pl.when(j == pl.num_programs(1) - 1)
    def _():
        o_ref[...] = acc_ref[...].astype(o_ref.dtype)


# -----------------------------------------------------------------------------
# One-time parameter prep
# -----------------------------------------------------------------------------
def prepare_rffn_params(w1, b1, w2, compute_dtype=jnp.bfloat16, feat_tile=1024):
    """Transpose, fold the bias, and lane-pad the RFFN parameters once.

    w1: (nfeat, in_dim), b1: (nfeat,), w2: (out_dim, nfeat).
    Returns (w1_aug, w2_t, out_dim) with
      w1_aug: (in_dim + 1, nfeat_p)   -- last row is the bias (x gets a ones col)
      w2_t:   (nfeat_p, out_dim_p)    -- padded rows are zero, so padded
                                         features (exp(0)=1) contribute nothing.
    nfeat is padded to a multiple of 128 and, if larger than feat_tile, to a
    multiple of feat_tile so the reduction tile divides it exactly (no gcd
    collapse). compute_dtype=bfloat16 halves W1/W2 HBM traffic and uses the
    bf16-native MXU on v5e/v6e/v7x; activations/accumulation stay f32 in-kernel.
    """
    nfeat, in_dim = w1.shape
    out_dim = w2.shape[0]

    feat_tile = max(128, (int(feat_tile) // 128) * 128)
    nfeat_p = _round_up(nfeat, 128)
    if nfeat_p > feat_tile:
        nfeat_p = _round_up(nfeat_p, feat_tile)
    out_dim_p = _round_up(out_dim, 128)

    # W1 transposed + bias folded in as the last contraction row.
    w1_aug = jnp.zeros((in_dim + 1, nfeat_p), compute_dtype)
    w1_aug = w1_aug.at[:in_dim, :nfeat].set(jnp.transpose(w1).astype(compute_dtype))
    w1_aug = w1_aug.at[in_dim, :nfeat].set(b1.astype(compute_dtype))

    # W2 transposed; zero-padded rows cancel the exp(0)=1 padded features.
    w2_t = jnp.zeros((nfeat_p, out_dim_p), compute_dtype)
    w2_t = w2_t.at[:nfeat, :out_dim].set(jnp.transpose(w2).astype(compute_dtype))

    return w1_aug, w2_t, out_dim


def _pick_feat_tile(nfeat_p, tn):
    """Largest multiple of 128 that divides nfeat_p and is <= tn (always valid)."""
    tn = max(128, (int(tn) // 128) * 128)
    tn = min(tn, nfeat_p)
    best = 128
    for k in range(1, nfeat_p // 128 + 1):
        cand = k * 128
        if cand > tn:
            break
        if nfeat_p % cand == 0:
            best = cand
    return best


def _pick_batch_tiling(batch, tb):
    """Even batch-tile split; guarantees >=2 tiles for large batches (v7x)."""
    tb = max(8, (int(tb) // 8) * 8)
    b8 = _round_up(batch, 8)
    tb_eff = min(tb, b8)
    ntiles = _cdiv(b8, tb_eff)
    # v7x has 2 TensorCores: make sure the "parallel" batch axis has >= 2 blocks
    # once the batch is large enough (>= 2 x 512 rows) to amortize the extra
    # weight sweep on single-TC chips.
    if ntiles == 1 and b8 >= 1024:
        ntiles = 2
    tb_eff = _round_up(_cdiv(b8, ntiles), 8)   # even split softens the pad cliff
    return ntiles, tb_eff, ntiles * tb_eff


# -----------------------------------------------------------------------------
# Forward
# -----------------------------------------------------------------------------
@functools.partial(
    jax.jit,
    static_argnames=("out_dim", "tb", "tn", "w2_buffers", "exp_dtype"))
def rffn_forward(x, w1_aug, w2_t, out_dim, tb=1024, tn=1024,
                 w2_buffers=2, exp_dtype=jnp.float32):
    """x: (B, in_dim). Params from prepare_rffn_params. Returns (B, out_dim)."""
    B, in_dim = x.shape
    k_dim = in_dim + 1                       # ones column for the folded bias
    assert w1_aug.shape[0] == k_dim, "w1_aug must come from prepare_rffn_params"
    nfeat_p = w1_aug.shape[1]
    out_dim_p = w2_t.shape[1]
    cdtype = w1_aug.dtype

    tn_eff = _pick_feat_tile(nfeat_p, tn)
    ntiles, tb_eff, B_p = _pick_batch_tiling(B, tb)

    # Augment x with a ones column (bias) and pad the batch to B_p rows.
    x_aug = jnp.concatenate(
        [x.astype(cdtype), jnp.ones((B, 1), cdtype)], axis=1)
    if B_p != B:
        x_aug = jnp.pad(x_aug, ((0, B_p - B), (0, 0)))

    grid = (ntiles, nfeat_p // tn_eff)       # (batch tiles, reduction tiles)

    # W2 is the only large streamed input; allow deeper pipelining (v5e).
    w2_spec_kwargs = {}
    if w2_buffers > 2:
        w2_spec_kwargs["pipeline_mode"] = pl.Buffered(w2_buffers)

    # VMEM budget from the actual tiles (double buffers + f32 temporaries);
    # cap at ~48 MiB so the same tiling also fits v7x's 64 MiB physical VMEM.
    itemsize = jnp.dtype(cdtype).itemsize
    vmem_est = (
        2 * tb_eff * k_dim * itemsize                          # x
        + 2 * k_dim * tn_eff * itemsize                        # W1
        + max(2, w2_buffers) * tn_eff * out_dim_p * itemsize   # W2
        + tb_eff * out_dim_p * 4                               # acc scratch
        + 2 * tb_eff * out_dim_p * 4                           # output
        + 3 * tb_eff * tn_eff * 4                              # h / g temporaries
    )
    vmem_limit = int(min(max(32 << 20, int(vmem_est * 1.5)), 48 << 20))

    kernel = functools.partial(rffn_kernel, exp_dtype=exp_dtype)

    out_p = pl.pallas_call(
        kernel,
        out_shape=jax.ShapeDtypeStruct((B_p, out_dim_p), jnp.float32),
        grid=grid,
        in_specs=[
            # x tile: resident across the nfeat sweep (block index ignores j)
            pl.BlockSpec((tb_eff, k_dim), lambda i, j: (i, 0)),
            # W1 (bias-augmented) tile streams along nfeat
            pl.BlockSpec((k_dim, tn_eff), lambda i, j: (0, j)),
            # W2 tile streams along nfeat
            pl.BlockSpec((tn_eff, out_dim_p), lambda i, j: (j, 0),
                         **w2_spec_kwargs),
        ],
        # Output block revisited across the reduction axis (accumulator).
        out_specs=pl.BlockSpec((tb_eff, out_dim_p), lambda i, j: (i, 0)),
        scratch_shapes=[pltpu.VMEM((tb_eff, out_dim_p), jnp.float32)],
        compiler_params=pltpu.CompilerParams(
            dimension_semantics=("parallel", "arbitrary"),
            vmem_limit_bytes=vmem_limit,
        ),
    )(x_aug, w1_aug, w2_t)

    return out_p[:B, :out_dim]


def rffn_reference(x, w1, b1, w2):
    h = x @ w1.T + b1
    g = jnp.exp(-(h ** 2))
    return g @ w2.T


# -----------------------------------------------------------------------------
# Self-test
# -----------------------------------------------------------------------------
if __name__ == "__main__":
    # Small shapes consistent with the module; nfeat is a non-multiple of 128,
    # and small tiles are used below purely to exercise the padded-feature,
    # multi-batch-tile, and multi-reduction-tile paths (never benchmark at
    # these tile sizes).
    in_dim, out_dim, nfeat = 4, 4, 200
    batch = 16

    key = jax.random.PRNGKey(0)
    kx, kw1, kb1, kw2 = jax.random.split(key, 4)

    x = jax.random.normal(kx, (batch, in_dim), dtype=jnp.float32)

    # First linear: PyTorch default init ~ U(-1/sqrt(in_dim), 1/sqrt(in_dim)).
    bound = 1.0 / np.sqrt(in_dim)
    w1 = jax.random.uniform(kw1, (nfeat, in_dim), minval=-bound, maxval=bound,
                            dtype=jnp.float32)
    b1 = jax.random.uniform(kb1, (nfeat,), minval=-bound, maxval=bound,
                            dtype=jnp.float32)
    # NOTE: RFFN.reset_parameters() zero-inits W2; a nonzero W2 is used first so
    # the asserts actually validate the matmul/bias/activation paths.
    w2 = jax.random.normal(kw2, (out_dim, nfeat), dtype=jnp.float32) * 0.1

    ref = rffn_reference(x, w1, b1, w2)

    # 1) Default (bf16 weights/activations-on-MXU, f32 exp/accumulator).
    w1a_bf, w2t_bf, od = prepare_rffn_params(w1, b1, w2)     # bf16 default
    out_bf = rffn_forward(x, w1a_bf, w2t_bf, out_dim=od)
    jax.block_until_ready(out_bf)
    np.testing.assert_allclose(np.asarray(out_bf), np.asarray(ref),
                               rtol=3e-2, atol=3e-2)

    # 2) f32 path, tight tolerance; small tiles to exercise the 2-batch-tile
    #    and 2-reduction-tile (accumulator) code paths.
    w1a_f32, w2t_f32, _ = prepare_rffn_params(w1, b1, w2,
                                              compute_dtype=jnp.float32)
    out_f32 = rffn_forward(x, w1a_f32, w2t_f32, out_dim=od, tb=8, tn=128)
    jax.block_until_ready(out_f32)
    np.testing.assert_allclose(np.asarray(out_f32), np.asarray(ref),
                               rtol=5e-5, atol=5e-5)

    # 3) Optional bf16-exp knob (v6e/v7x EUP); looser tolerance.
    out_bfx = rffn_forward(x, w1a_bf, w2t_bf, out_dim=od,
                           exp_dtype=jnp.bfloat16)
    jax.block_until_ready(out_bfx)
    np.testing.assert_allclose(np.asarray(out_bfx), np.asarray(ref),
                               rtol=8e-2, atol=8e-2)

    # 4) The module's actual init (zero W2) must give exactly zero output.
    w2_zero = jnp.zeros((out_dim, nfeat), dtype=jnp.float32)
    w1a_z, w2t_z, odz = prepare_rffn_params(w1, b1, w2_zero)
    out_zero = rffn_forward(x, w1a_z, w2t_z, out_dim=odz)
    jax.block_until_ready(out_zero)
    np.testing.assert_allclose(np.asarray(out_zero),
                               np.zeros((batch, out_dim), np.float32),
                               rtol=0, atol=1e-7)

    print("KERNEL_OK")
</pallas_src>

<mosaic_0001>
module attributes {stable_mosaic.version = 11 : i64} {
  func.func @rffn_kernel(%arg0: i32, %arg1: i32, %arg2: memref<16x5xbf16, #tpu.memory_space<vmem>>, %arg3: memref<5x256xbf16, #tpu.memory_space<vmem>>, %arg4: memref<256x128xbf16, #tpu.memory_space<vmem>>, %arg5: memref<16x128xf32, #tpu.memory_space<vmem>>, %arg6: memref<16x128xf32, #tpu.memory_space<vmem>>) attributes {dimension_semantics = [#tpu.dimension_semantics<parallel>, #tpu.dimension_semantics<arbitrary>], iteration_bounds = array<i64: 1, 1>, scalar_prefetch = 0 : i64, scratch_operands = 1 : i64, tpu.core_type = #tpu.core_type<tc>, window_params = [{transform_indices = @transform_0, window_bounds = array<i64: 16, 5>}, {transform_indices = @transform_1, window_bounds = array<i64: 5, 256>}, {transform_indices = @transform_2, window_bounds = array<i64: 256, 128>}, {transform_indices = @transform_3, window_bounds = array<i64: 16, 128>}]} {
    %c0_i32 = arith.constant 0 : i32
    %0 = arith.cmpi eq, %arg1, %c0_i32 : i32
    %1 = arith.extui %0 : i1 to i32
    %c0_i32_0 = arith.constant 0 : i32
    %2 = arith.cmpi ne, %1, %c0_i32_0 : i32
    scf.if %2 {
      %cst_14 = arith.constant 0.000000e+00 : f32
      %19 = vector.broadcast %cst_14 : f32 to vector<16x128xf32>
      %c0_15 = arith.constant 0 : index
      %c0_16 = arith.constant 0 : index
      %20 = vector.load %arg6[%c0_15, %c0_16] : memref<16x128xf32, #tpu.memory_space<vmem>>, vector<16x128xf32>
      tpu.vector_store %arg6[%c0_15, %c0_16], %19 {strides = array<i32>} : memref<16x128xf32, #tpu.memory_space<vmem>>, vector<16x128xf32>,
    } else {
    }
    %c0 = arith.constant 0 : index
    %c0_1 = arith.constant 0 : index
    %3 = vector.load %arg2[%c0, %c0_1] : memref<16x5xbf16, #tpu.memory_space<vmem>>, vector<16x5xbf16>
    %c0_2 = arith.constant 0 : index
    %c0_3 = arith.constant 0 : index
    %4 = vector.load %arg3[%c0_2, %c0_3] : memref<5x256xbf16, #tpu.memory_space<vmem>>, vector<5x256xbf16>
    %cst = arith.constant dense<0.000000e+00> : vector<16x256xf32>
    %5 = tpu.matmul %3, %4, %cst {dimension_numbers = #tpu.dot_dimension_numbers<[1], [0], [0], [1], [0, 0, 1, 1], [], []>} : vector<16x5xbf16>, vector<5x256xbf16>, vector<16x256xf32> -> vector<16x256xf32>
    %cst_4 = arith.constant 0.000000e+00 : f32
    %6 = vector.broadcast %cst_4 : f32 to vector<16x256xf32>
    %7 = arith.subf %6, %5 : vector<16x256xf32>
    %8 = arith.mulf %5, %7 : vector<16x256xf32>
    %9 = math.exp %8 : vector<16x256xf32>
    %c0_5 = arith.constant 0 : index
    %c0_6 = arith.constant 0 : index
    %10 = vector.load %arg6[%c0_5, %c0_6] : memref<16x128xf32, #tpu.memory_space<vmem>>, vector<16x128xf32>
    %11 = arith.truncf %9 : vector<16x256xf32> to vector<16x256xbf16>
    %c0_7 = arith.constant 0 : index
    %c0_8 = arith.constant 0 : index
    %12 = vector.load %arg4[%c0_7, %c0_8] : memref<256x128xbf16, #tpu.memory_space<vmem>>, vector<256x128xbf16>
    %cst_9 = arith.constant dense<0.000000e+00> : vector<16x128xf32>
    %13 = tpu.matmul %11, %12, %cst_9 {dimension_numbers = #tpu.dot_dimension_numbers<[1], [0], [0], [1], [0, 0, 1, 1], [], []>} : vector<16x256xbf16>, vector<256x128xbf16>, vector<16x128xf32> -> vector<16x128xf32>
    %14 = arith.addf %10, %13 : vector<16x128xf32>
    %c0_10 = arith.constant 0 : index
    %c0_11 = arith.constant 0 : index
    %15 = vector.load %arg6[%c0_10, %c0_11] : memref<16x128xf32, #tpu.memory_space<vmem>>, vector<16x128xf32>
    tpu.vector_store %arg6[%c0_10, %c0_11], %14 {strides = array<i32>} : memref<16x128xf32, #tpu.memory_space<vmem>>, vector<16x128xf32>,
    %c0_i32_12 = arith.constant 0 : i32
    %16 = arith.cmpi eq, %arg1, %c0_i32_12 : i32
    %17 = arith.extui %16 : i1 to i32
    %c0_i32_13 = arith.constant 0 : i32
    %18 = arith.cmpi ne, %17, %c0_i32_13 : i32
    scf.if %18 {
      %c0_14 = arith.constant 0 : index
      %c0_15 = arith.constant 0 : index
      %19 = vector.load %arg6[%c0_14, %c0_15] : memref<16x128xf32, #tpu.memory_space<vmem>>, vector<16x128xf32>
      %c0_16 = arith.constant 0 : index
      %c0_17 = arith.constant 0 : index
      %20 = vector.load %arg5[%c0_16, %c0_17] : memref<16x128xf32, #tpu.memory_space<vmem>>, vector<16x128xf32>
      tpu.vector_store %arg5[%c0_16, %c0_17], %19 {strides = array<i32>} : memref<16x128xf32, #tpu.memory_space<vmem>>, vector<16x128xf32>,
    } else {
    }
    return
  }
  func.func @transform_0(%arg0: i32, %arg1: i32) -> (i32, i32) {
    %c0_i32 = arith.constant 0 : i32
    %c0_i32_0 = arith.constant 0 : i32
    return %arg0, %c0_i32 : i32, i32
  }
  func.func @transform_1(%arg0: i32, %arg1: i32) -> (i32, i32) {
    %c0_i32 = arith.constant 0 : i32
    %c0_i32_0 = arith.constant 0 : i32
    return %c0_i32, %arg1 : i32, i32
  }
  func.func @transform_2(%arg0: i32, %arg1: i32) -> (i32, i32) {
    %c0_i32 = arith.constant 0 : i32
    %c0_i32_0 = arith.constant 0 : i32
    return %arg1, %c0_i32 : i32, i32
  }
  func.func @transform_3(%arg0: i32, %arg1: i32) -> (i32, i32) {
    %c0_i32 = arith.constant 0 : i32
    %c0_i32_0 = arith.constant 0 : i32
    return %arg0, %c0_i32 : i32, i32
  }
}

</mosaic_0001>

<bundles_post_ra>
// kernel: rffn_forward.1
= control target key start
LH: loop header
LB: loop body
LE: loop exit
PB: predicated region body
PF: predicated region fallthrough
CT: control target
= control target key end

     0   :  { %8 = vsyncpa [#allocation4], 0  ;;  %s408_s12 = smov [#allocation3]   ;;  %s457_s0 = inlined_call_operand.vmem [shape: bf16[16,5], index: 0, kind: input, shape index: {}]   ;;  %s458_s1 = inlined_call_operand.vmem [shape: bf16[5,256], index: 1, kind: input, shape index: {}]   ;;  %s459_s2 = inlined_call_operand.hbm [shape: bf16[256,128], index: 2, kind: input, shape index: {}]   ;;  %s460_s3 = inlined_call_operand.vmem [shape: f32[16,128], index: 3, kind: output, shape index: {}]  }
   0x1   :  { %s18_s13 = sshll.u32 %s408_s12, 4  ;;  %s384_s16 = scalar_lea.hbm %s459_s2, 2048  ;;  %s19_s13 = int_to_ptr.vmem [resolvable:$true] %s18_s13 }
   0x2   :  { %p385_p0 = scmp.ne.s32.totalorder %s459_s2, %s384_s16  ;;  %p388_p1 = scmp.lt.u32.totalorder %s384_s16, %s459_s2 }
   0x4   :  { %p390_p2 = pnand %p388_p1, %p385_p0 }
   0x6   :  { %393 = shalt.err (!%p390_p2)
}
   0x7   :  { %s394_s21 = scalar_lea.vmem %s19_s13, 2048  ;;  %p399_p4 = scmp.lt.s32.totalorder %s19_s13, %s19_s13 }
   0x8   :  { %p395_p3 = scmp.ne.s32.totalorder %s19_s13, %s394_s21  ;;  %p400_p5 = scmp.lt.s32.totalorder %s394_s21, %s394_s21 }
   0xa   :  { %p401_p6 = por %p400_p5, %p399_p4 }
   0xc   :  { %p402_p7 = pnand %p401_p6, %p395_p3 }
   0xe   :  { %405 = shalt.err (!%p402_p7)
}
   0xf   :  { %s409_s22 = smov 64   ;;  %s410_s23 = smov 4  }
  0x10   :  { %24 = dma.hbm_to_vmem [thread:$0]  %s459_s2, 2048, %s19_s13, [#allocation4], %s409_s22, %s409_s22, %s410_s23  }
  0x11   :  { %406 = dma.done.wait [#allocation4], 2048  }
  0x12   :  { %407 = vsyncadd [#allocation4], 4294965248  ;;  %vm52_vm0 = vcmask 1041408   ;;  %v411_v0 = vmov 0   ;;  %vm53_vm1 = vcmask 1042432   ;;  %v412_v1 = vmov 65535  }
  0x13   :  { %94 = vmatprep.mubr.bf16.mxu0 %v411_v0  ;;  %v54_v2 = vsel %vm52_vm0, 4294967295, %v412_v1  ;;  %v37_v4 = vld [vmem:[%s458_s1] sm:$0x77]  ;;  %v362_v12 = vld [vmem:[#allocation3 + $0x48] sm:$0xff]   ;;  %vm48_vm2 = vcmask 39936   ;;  %v364_v14 = vld [vmem:[#allocation3 + $0x50] sm:$0xff]  }
  0x14   :  { %v55_v3 = vsel %vm53_vm1, %v54_v2, 0  ;;  %v312_v5 = vcombine.high %v37_v4, %v37_v4  ;;  %v311_v6 = vcombine.low %v37_v4, %v37_v4  ;;  %v360_v7 = vld [vmem:[#allocation3 + $0x40] sm:$0xff]   ;;  %v363_v13 = vld [vmem:[#allocation3 + $0x8] sm:$0xff]   ;;  %v365_v15 = vld [vmem:[#allocation3 + $0x10] sm:$0xff]  }
  0x15   :  { %v359_v10 = vld [vmem:[%s457_s0] sm:$0xff]   ;;  %330 = vmatprep.subr.bf16.mxu1 %v360_v7  ;;  %v366_v16 = vld [vmem:[#allocation3 + $0x58] sm:$0xff]   ;;  %v370_v20 = vld [vmem:[#allocation3 + $0x68] sm:$0xff]  }
  0x16   :  { %v60_v8 = vand.u32 %v312_v5, %v55_v3  ;;  %v57_v9 = vand.u32 %v311_v6, %v55_v3  ;;  %v361_v11 = vld [vmem:[#allocation3] sm:$0xff]   ;;  %v367_v17 = vld [vmem:[#allocation3 + $0x18] sm:$0xff]   ;;  %v371_v21 = vld [vmem:[#allocation3 + $0x28] sm:$0xff]  }
  0x17   :  { %331 = vmatpush3.bf16.msra.mxu1 %v361_v11  ;;  %v368_v18 = vld [vmem:[#allocation3 + $0x60] sm:$0xff]   ;;  %v372_v22 = vld [vmem:[#allocation3 + $0x70] sm:$0xff]   ;;  %v374_v24 = vld [vmem:[#allocation3 + $0x78] sm:$0xff]  }
  0x18   :  { %62 = vmatprep.subr.bf16.mxu0 %v60_v8  ;;  %332 = vmatprep.subr.bf16.mxu1 %v362_v12  ;;  %v369_v19 = vld [vmem:[#allocation3 + $0x20] sm:$0xff]   ;;  %v373_v23 = vld [vmem:[#allocation3 + $0x30] sm:$0xff]   ;;  %v375_v25 = vld [vmem:[#allocation3 + $0x38] sm:$0xff]  }
  0x19   :  { %63 = vmatpush1.bf16.msra.mxu0 %v57_v9 }
  0x1b   :  { %333 = vmatpush3.bf16.msra.mxu1 %v363_v13 }
  0x1c   :  { %313 = vmatmul.mubr.msk.bf16.vlgmr.msra.gmra.mrb[0].mxu0 %vm48_vm2, %v359_v10  ;;  %334 = vmatprep.subr.bf16.mxu1 %v364_v14 }
  0x1f   :  { %335 = vmatpush3.bf16.msra.mxu1 %v365_v15 }
  0x20   :  { %336 = vmatprep.subr.bf16.mxu1 %v366_v16 }
  0x23   :  { %337 = vmatpush3.bf16.msra.mxu1 %v367_v17 }
  0x24   :  { %338 = vmatprep.subr.bf16.mxu1 %v368_v18 }
  0x27   :  { %339 = vmatpush3.bf16.msra.mxu1 %v369_v19 }
  0x28   :  { %340 = vmatprep.subr.bf16.mxu1 %v370_v20 }
  0x2b   :  { %341 = vmatpush3.bf16.msra.mxu1 %v371_v21 }
  0x2c   :  { %342 = vmatprep.subr.bf16.mxu1 %v372_v22 }
  0x2f   :  { %343 = vmatpush3.bf16.msra.mxu1 %v373_v23 }
  0x30   :  { %344 = vmatprep.subr.bf16.mxu1 %v374_v24 }
  0x33   :  { %345 = vmatpush3.bf16.msra.mxu1 %v375_v25 }
  0xef   :  { %v96_v26 = vpop.f32.mrb[0].mxu0 }
  0xf0   :  { %v105_v27 = vsub.f32 0.0, %v96_v26  ;;  %v98_v28 = vpop.f32.mrb[1].mxu0 }
  0xf1   :  { %v106_v29 = vsub.f32 0.0, %v98_v28  ;;  %v100_v30 = vpop.f32.mrb[2].mxu0 }
  0xf2   :  { %v109_v31 = vmul.f32 %v105_v27, %v96_v26  ;;  %v107_v32 = vsub.f32 0.0, %v100_v30  ;;  %v102_v33 = vpop.f32.mrb[3].mxu0 }
  0xf3   :  { %v110_v34 = vmul.f32 %v106_v29, %v98_v28  ;;  %v108_v35 = vsub.f32 0.0, %v102_v33 }
  0xf4   :  { %v113_v36 = vmul.f32 1.442695, %v109_v31  ;;  %v111_v37 = vmul.f32 %v107_v32, %v100_v30 }
  0xf5   :  { %v115_v38 = vmul.f32 1.442695, %v110_v34  ;;  %v112_v39 = vmul.f32 %v108_v35, %v102_v33 }
  0xf6   :  { %376 = vpow2.f32 %v113_v36  ;;  %v117_v40 = vmul.f32 1.442695, %v111_v37 }
  0xf7   :  { %378 = vpow2.f32 %v115_v38  ;;  %v119_v41 = vmul.f32 1.442695, %v112_v39 }
  0xf8   :  { %380 = vpow2.f32 %v117_v40 }
  0xf9   :  { %382 = vpow2.f32 %v119_v41 }
 0x100   :  { %v377_v42 = vpop.eup %376 }
 0x101   :  { %v379_v43 = vpop.eup %378 }
 0x102   :  { %v381_v44 = vpop.eup %380 }
 0x103   :  { %v383_v45 = vpop.eup %382  ;;  %v123_v46 = vpack.c.bf16 %v381_v44, %v377_v42 }
 0x104   :  { %v124_v47 = vpack.c.bf16 %v383_v45, %v379_v43 }
 0x106   :  { %285 = vmatprep.mubr.bf16.mxu1 %v124_v47 }
 0x107   :  { %286 = vmatmul.mubr.bf16.vlgmr.msra.gmra.mrb[0].mxu1 %v123_v46 }
 0x1da   :  { %v346_v48 = vpop.f32.mrb[0].mxu1 }
 0x1db   :  { %v347_v49 = vpop.f32.mrb[1].mxu1 }
 0x1dc   :  { %v348_v50 = vadd.f32 %v347_v49, %v346_v48  ;;  %v349_v51 = vpop.f32.mrb[2].mxu1 }
 0x1dd   :  { %v350_v52 = vpop.f32.mrb[3].mxu1 }
 0x1de   :  { %303 = vst [vmem:[%s460_s3] sm:$0xff] %v348_v50  ;;  %v351_v53 = vadd.f32 %v350_v52, %v349_v51 }
 0x1e0   :  { %304 = vst [vmem:[%s460_s3 + $0x8] sm:$0xff] %v351_v53 }
 0x1e1   :  { %309 = vsyncpa [#allocation4], 1 }

</bundles_post_ra>
